<compile_context>
chip_gen: v7x
topology: tpu7x:2x2x1
jax: 0.10.0
libtpu: 0.0.40
codegen_flags: <defaults>
</compile_context>

<pallas_src>
import jax
import jax.numpy as jnp
from jax.experimental import pallas as pl
from jax.experimental.pallas import tpu as pltpu


def _round_up(x, m):
    return ((x + m - 1) // m) * m


def _inverse_mlp_kernel(obs_ref, nxt_ref,
                        w1a_ref, w1b_ref, b1_ref,
                        w2_ref, b2_ref,
                        w3_ref, b3_ref,
                        w4_ref, b4_ref,
                        o_ref):
    """Fused 4-layer MLP (concat folded into split first layer).

    f32 input tiles are cast to bf16 in-kernel (VPU, free) for the MXU; all
    accumulation is f32. Dropout (p=0.2) is identity in eval mode.
    """
    obs = obs_ref[...].astype(jnp.bfloat16)   # (tile_m, obs_dim)
    nxt = nxt_ref[...].astype(jnp.bfloat16)   # (tile_m, next_obs_dim)

    # Layer 1: concat fused as two MXU pushes.
    h1 = (jnp.dot(obs, w1a_ref[...], preferred_element_type=jnp.float32)
          + jnp.dot(nxt, w1b_ref[...], preferred_element_type=jnp.float32)
          + b1_ref[...])
    h1 = jnp.maximum(h1, 0.0)

    # Layer 2 (64 -> 64).
    h2 = jnp.dot(h1.astype(jnp.bfloat16), w2_ref[...],
                 preferred_element_type=jnp.float32) + b2_ref[...]
    h2 = jnp.maximum(h2, 0.0)

    # Layer 3 (64 -> 16).
    h3 = jnp.dot(h2.astype(jnp.bfloat16), w3_ref[...],
                 preferred_element_type=jnp.float32) + b3_ref[...]
    h3 = jnp.maximum(h3, 0.0)

    # Layer 4 (16 -> out_dim): store only the real columns (no lane padding).
    o_ref[...] = (jnp.dot(h3.astype(jnp.bfloat16), w4_ref[...],
                          preferred_element_type=jnp.float32)
                  + b4_ref[...]).astype(o_ref.dtype)


def prepare_params(params, obs_dim):
    """One-time weight prep (hoisted out of the forward hot path)."""
    (w1, b1), (w2, b2), (w3, b3), (w4, b4) = params
    return dict(
        w1a=jnp.asarray(w1[:obs_dim, :], jnp.bfloat16),
        w1b=jnp.asarray(w1[obs_dim:, :], jnp.bfloat16),
        b1=jnp.asarray(b1, jnp.float32).reshape(1, -1),
        w2=jnp.asarray(w2, jnp.bfloat16),
        b2=jnp.asarray(b2, jnp.float32).reshape(1, -1),
        w3=jnp.asarray(w3, jnp.bfloat16),
        b3=jnp.asarray(b3, jnp.float32).reshape(1, -1),
        w4=jnp.asarray(w4, jnp.bfloat16),
        b4=jnp.asarray(b4, jnp.float32).reshape(1, -1),
    )


@jax.jit
def inverse_model_forward(observation, next_observation, prepped):
    """Launches the fused MLP kernel. Inputs stay f32 (cast happens in-kernel)."""
    if observation.ndim == 1:
        observation = observation[None, :]
    if next_observation.ndim == 1:
        next_observation = next_observation[None, :]

    obs = observation.astype(jnp.float32)
    nxt = next_observation.astype(jnp.float32)

    batch, obs_dim = obs.shape
    nxt_dim = nxt.shape[1]
    hidden = prepped["w1a"].shape[1]
    mid = prepped["w3"].shape[1]
    out_dim = prepped["w4"].shape[1]

    # Batch tiling: one step for small/medium batches; >=2 steps (<=4096 rows,
    # multiple of 8) for larger ones so v7x's two TensorCores both get work.
    # No wrapper-side padding: a non-dividing final block is handled by Pallas.
    if batch <= 2048:
        tile_m = batch
    else:
        tile_m = min(4096, _round_up(pl.cdiv(batch, 2), 8))
    grid = (pl.cdiv(batch, tile_m),)

    flops = 2 * batch * ((obs_dim + nxt_dim) * hidden
                         + hidden * hidden
                         + hidden * mid
                         + mid * out_dim)
    weight_bytes = sum(int(prepped[k].size) * prepped[k].dtype.itemsize
                       for k in prepped)
    bytes_accessed = ((int(obs.size) + int(nxt.size)) * 4
                      + batch * out_dim * 4
                      + weight_bytes)
    cost = pl.CostEstimate(flops=flops, transcendentals=0,
                           bytes_accessed=bytes_accessed)

    full = lambda a: pl.BlockSpec(a.shape, lambda i: (0, 0))  # resident weights

    return pl.pallas_call(
        _inverse_mlp_kernel,
        out_shape=jax.ShapeDtypeStruct((batch, out_dim), jnp.float32),
        grid=grid,
        in_specs=[
            pl.BlockSpec((tile_m, obs_dim), lambda i: (i, 0)),
            pl.BlockSpec((tile_m, nxt_dim), lambda i: (i, 0)),
            full(prepped["w1a"]), full(prepped["w1b"]), full(prepped["b1"]),
            full(prepped["w2"]), full(prepped["b2"]),
            full(prepped["w3"]), full(prepped["b3"]),
            full(prepped["w4"]), full(prepped["b4"]),
        ],
        out_specs=pl.BlockSpec((tile_m, out_dim), lambda i: (i, 0)),
        compiler_params=pltpu.CompilerParams(
            dimension_semantics=("parallel",)),
        cost_estimate=cost,
    )(obs, nxt,
      prepped["w1a"], prepped["w1b"], prepped["b1"],
      prepped["w2"], prepped["b2"],
      prepped["w3"], prepped["b3"],
      prepped["w4"], prepped["b4"])


def init_params(key, input_dim, output_dim, hidden_dim=64):
    """PyTorch-Linear-style init: U(-1/sqrt(fan_in), 1/sqrt(fan_in))."""
    dims = [(input_dim, hidden_dim), (hidden_dim, hidden_dim),
            (hidden_dim, 16), (16, output_dim)]
    params = []
    for (fan_in, fan_out) in dims:
        key, kw, kb = jax.random.split(key, 3)
        bound = 1.0 / jnp.sqrt(jnp.float32(fan_in))
        w = jax.random.uniform(kw, (fan_in, fan_out), jnp.float32, -bound, bound)
        b = jax.random.uniform(kb, (1, fan_out), jnp.float32, -bound, bound)
        params.append((w, b))
    return params


def _reference_forward(observation, next_observation, params):
    """Plain-JAX reference mimicking the kernel's bf16-matmul / f32-accum path."""
    if observation.ndim == 1:
        observation = observation[None, :]
    if next_observation.ndim == 1:
        next_observation = next_observation[None, :]
    x = jnp.concatenate([observation, next_observation], axis=1).astype(jnp.bfloat16)
    (w1, b1), (w2, b2), (w3, b3), (w4, b4) = params
    h = jnp.maximum(jnp.dot(x, w1.astype(jnp.bfloat16),
                            preferred_element_type=jnp.float32) + b1, 0.0)
    h = jnp.maximum(jnp.dot(h.astype(jnp.bfloat16), w2.astype(jnp.bfloat16),
                            preferred_element_type=jnp.float32) + b2, 0.0)
    h = jnp.maximum(jnp.dot(h.astype(jnp.bfloat16), w3.astype(jnp.bfloat16),
                            preferred_element_type=jnp.float32) + b3, 0.0)
    return jnp.dot(h.astype(jnp.bfloat16), w4.astype(jnp.bfloat16),
                   preferred_element_type=jnp.float32) + b4


if __name__ == "__main__":
    key = jax.random.PRNGKey(0)

    obs_dim = 8
    next_obs_dim = 8
    input_dim = obs_dim + next_obs_dim   # concat([obs, next_obs], dim=1)
    output_dim = 4
    hidden_dim = 64

    key, k_params = jax.random.split(key)
    params = init_params(k_params, input_dim, output_dim, hidden_dim)
    prepped = prepare_params(params, obs_dim)   # one-time weight prep

    # Small primary test (batch=2, single grid step, full-dim blocks).
    key, k_obs, k_next = jax.random.split(key, 3)
    observation = jax.random.normal(k_obs, (2, obs_dim), jnp.float32)
    next_observation = jax.random.normal(k_next, (2, next_obs_dim), jnp.float32)

    out = inverse_model_forward(observation, next_observation, prepped)
    out = jax.block_until_ready(out)
    ref = _reference_forward(observation, next_observation, params)
    assert out.shape == (2, output_dim)
    assert jnp.allclose(out, ref, atol=2e-3, rtol=2e-3), \
        f"max abs err {jnp.max(jnp.abs(out - ref))}"

    # Larger test exercising the multi-tile grid and the non-dividing tail block.
    key, k_obs2, k_next2 = jax.random.split(key, 3)
    obs2 = jax.random.normal(k_obs2, (2500, obs_dim), jnp.float32)
    nxt2 = jax.random.normal(k_next2, (2500, next_obs_dim), jnp.float32)
    out2 = jax.block_until_ready(inverse_model_forward(obs2, nxt2, prepped))
    ref2 = _reference_forward(obs2, nxt2, params)
    assert out2.shape == (2500, output_dim)
    assert jnp.allclose(out2, ref2, atol=2e-3, rtol=2e-3), \
        f"max abs err {jnp.max(jnp.abs(out2 - ref2))}"

    print("KERNEL_OK")
</pallas_src>

<mosaic_0001>
module attributes {stable_mosaic.version = 11 : i64} {
  func.func @_inverse_mlp_kernel(%arg0: i32, %arg1: memref<2x8xf32, #tpu.memory_space<vmem>>, %arg2: memref<2x8xf32, #tpu.memory_space<vmem>>, %arg3: memref<8x64xbf16, #tpu.memory_space<vmem>>, %arg4: memref<8x64xbf16, #tpu.memory_space<vmem>>, %arg5: memref<1x64xf32, #tpu.memory_space<vmem>>, %arg6: memref<64x64xbf16, #tpu.memory_space<vmem>>, %arg7: memref<1x64xf32, #tpu.memory_space<vmem>>, %arg8: memref<64x16xbf16, #tpu.memory_space<vmem>>, %arg9: memref<1x16xf32, #tpu.memory_space<vmem>>, %arg10: memref<16x4xbf16, #tpu.memory_space<vmem>>, %arg11: memref<1x4xf32, #tpu.memory_space<vmem>>, %arg12: memref<2x4xf32, #tpu.memory_space<vmem>>) attributes {dimension_semantics = [#tpu.dimension_semantics<parallel>], iteration_bounds = array<i64: 1>, scalar_prefetch = 0 : i64, scratch_operands = 0 : i64, tpu.core_type = #tpu.core_type<tc>, window_params = [{transform_indices = @transform_0, window_bounds = array<i64: 2, 8>}, {transform_indices = @transform_1, window_bounds = array<i64: 2, 8>}, {pipeline_mode = #tpu.pipeline_mode<synchronous>, transform_indices = @transform_2, window_bounds = array<i64: 8, 64>}, {pipeline_mode = #tpu.pipeline_mode<synchronous>, transform_indices = @transform_3, window_bounds = array<i64: 8, 64>}, {pipeline_mode = #tpu.pipeline_mode<synchronous>, transform_indices = @transform_4, window_bounds = array<i64: 1, 64>}, {pipeline_mode = #tpu.pipeline_mode<synchronous>, transform_indices = @transform_5, window_bounds = array<i64: 64, 64>}, {pipeline_mode = #tpu.pipeline_mode<synchronous>, transform_indices = @transform_6, window_bounds = array<i64: 1, 64>}, {pipeline_mode = #tpu.pipeline_mode<synchronous>, transform_indices = @transform_7, window_bounds = array<i64: 64, 16>}, {pipeline_mode = #tpu.pipeline_mode<synchronous>, transform_indices = @transform_8, window_bounds = array<i64: 1, 16>}, {pipeline_mode = #tpu.pipeline_mode<synchronous>, transform_indices = @transform_9, window_bounds = array<i64: 16, 4>}, {pipeline_mode = #tpu.pipeline_mode<synchronous>, transform_indices = @transform_10, window_bounds = array<i64: 1, 4>}, {transform_indices = @transform_11, window_bounds = array<i64: 2, 4>}]} {
    %c0 = arith.constant 0 : index
    %c0_0 = arith.constant 0 : index
    %0 = vector.load %arg1[%c0, %c0_0] : memref<2x8xf32, #tpu.memory_space<vmem>>, vector<2x8xf32>
    %1 = arith.truncf %0 : vector<2x8xf32> to vector<2x8xbf16>
    %c0_1 = arith.constant 0 : index
    %c0_2 = arith.constant 0 : index
    %2 = vector.load %arg2[%c0_1, %c0_2] : memref<2x8xf32, #tpu.memory_space<vmem>>, vector<2x8xf32>
    %3 = arith.truncf %2 : vector<2x8xf32> to vector<2x8xbf16>
    %c0_3 = arith.constant 0 : index
    %c0_4 = arith.constant 0 : index
    %4 = vector.load %arg3[%c0_3, %c0_4] : memref<8x64xbf16, #tpu.memory_space<vmem>>, vector<8x64xbf16>
    %cst = arith.constant dense<0.000000e+00> : vector<2x64xf32>
    %5 = tpu.matmul %1, %4, %cst {dimension_numbers = #tpu.dot_dimension_numbers<[1], [0], [0], [1], [0, 0, 1, 1], [], []>} : vector<2x8xbf16>, vector<8x64xbf16>, vector<2x64xf32> -> vector<2x64xf32>
    %c0_5 = arith.constant 0 : index
    %c0_6 = arith.constant 0 : index
    %6 = vector.load %arg4[%c0_5, %c0_6] : memref<8x64xbf16, #tpu.memory_space<vmem>>, vector<8x64xbf16>
    %cst_7 = arith.constant dense<0.000000e+00> : vector<2x64xf32>
    %7 = tpu.matmul %3, %6, %cst_7 {dimension_numbers = #tpu.dot_dimension_numbers<[1], [0], [0], [1], [0, 0, 1, 1], [], []>} : vector<2x8xbf16>, vector<8x64xbf16>, vector<2x64xf32> -> vector<2x64xf32>
    %8 = arith.addf %5, %7 : vector<2x64xf32>
    %c0_8 = arith.constant 0 : index
    %c0_9 = arith.constant 0 : index
    %9 = vector.load %arg5[%c0_8, %c0_9] : memref<1x64xf32, #tpu.memory_space<vmem>>, vector<1x64xf32>
    %10 = vector.broadcast %9 : vector<1x64xf32> to vector<2x64xf32>
    %11 = arith.addf %8, %10 : vector<2x64xf32>
    %cst_10 = arith.constant 0.000000e+00 : f32
    %12 = vector.broadcast %cst_10 : f32 to vector<2x64xf32>
    %13 = arith.maximumf %11, %12 : vector<2x64xf32>
    %14 = arith.truncf %13 : vector<2x64xf32> to vector<2x64xbf16>
    %c0_11 = arith.constant 0 : index
    %c0_12 = arith.constant 0 : index
    %15 = vector.load %arg6[%c0_11, %c0_12] : memref<64x64xbf16, #tpu.memory_space<vmem>>, vector<64x64xbf16>
    %cst_13 = arith.constant dense<0.000000e+00> : vector<2x64xf32>
    %16 = tpu.matmul %14, %15, %cst_13 {dimension_numbers = #tpu.dot_dimension_numbers<[1], [0], [0], [1], [0, 0, 1, 1], [], []>} : vector<2x64xbf16>, vector<64x64xbf16>, vector<2x64xf32> -> vector<2x64xf32>
    %c0_14 = arith.constant 0 : index
    %c0_15 = arith.constant 0 : index
    %17 = vector.load %arg7[%c0_14, %c0_15] : memref<1x64xf32, #tpu.memory_space<vmem>>, vector<1x64xf32>
    %18 = vector.broadcast %17 : vector<1x64xf32> to vector<2x64xf32>
    %19 = arith.addf %16, %18 : vector<2x64xf32>
    %cst_16 = arith.constant 0.000000e+00 : f32
    %20 = vector.broadcast %cst_16 : f32 to vector<2x64xf32>
    %21 = arith.maximumf %19, %20 : vector<2x64xf32>
    %22 = arith.truncf %21 : vector<2x64xf32> to vector<2x64xbf16>
    %c0_17 = arith.constant 0 : index
    %c0_18 = arith.constant 0 : index
    %23 = vector.load %arg8[%c0_17, %c0_18] : memref<64x16xbf16, #tpu.memory_space<vmem>>, vector<64x16xbf16>
    %cst_19 = arith.constant dense<0.000000e+00> : vector<2x16xf32>
    %24 = tpu.matmul %22, %23, %cst_19 {dimension_numbers = #tpu.dot_dimension_numbers<[1], [0], [0], [1], [0, 0, 1, 1], [], []>} : vector<2x64xbf16>, vector<64x16xbf16>, vector<2x16xf32> -> vector<2x16xf32>
    %c0_20 = arith.constant 0 : index
    %c0_21 = arith.constant 0 : index
    %25 = vector.load %arg9[%c0_20, %c0_21] : memref<1x16xf32, #tpu.memory_space<vmem>>, vector<1x16xf32>
    %26 = vector.broadcast %25 : vector<1x16xf32> to vector<2x16xf32>
    %27 = arith.addf %24, %26 : vector<2x16xf32>
    %cst_22 = arith.constant 0.000000e+00 : f32
    %28 = vector.broadcast %cst_22 : f32 to vector<2x16xf32>
    %29 = arith.maximumf %27, %28 : vector<2x16xf32>
    %30 = arith.truncf %29 : vector<2x16xf32> to vector<2x16xbf16>
    %c0_23 = arith.constant 0 : index
    %c0_24 = arith.constant 0 : index
    %31 = vector.load %arg10[%c0_23, %c0_24] : memref<16x4xbf16, #tpu.memory_space<vmem>>, vector<16x4xbf16>
    %cst_25 = arith.constant dense<0.000000e+00> : vector<2x4xf32>
    %32 = tpu.matmul %30, %31, %cst_25 {dimension_numbers = #tpu.dot_dimension_numbers<[1], [0], [0], [1], [0, 0, 1, 1], [], []>} : vector<2x16xbf16>, vector<16x4xbf16>, vector<2x4xf32> -> vector<2x4xf32>
    %c0_26 = arith.constant 0 : index
    %c0_27 = arith.constant 0 : index
    %33 = vector.load %arg11[%c0_26, %c0_27] : memref<1x4xf32, #tpu.memory_space<vmem>>, vector<1x4xf32>
    %34 = vector.broadcast %33 : vector<1x4xf32> to vector<2x4xf32>
    %35 = arith.addf %32, %34 : vector<2x4xf32>
    %c0_28 = arith.constant 0 : index
    %c0_29 = arith.constant 0 : index
    %36 = vector.load %arg12[%c0_28, %c0_29] : memref<2x4xf32, #tpu.memory_space<vmem>>, vector<2x4xf32>
    tpu.vector_store %arg12[%c0_28, %c0_29], %35 {strides = array<i32>} : memref<2x4xf32, #tpu.memory_space<vmem>>, vector<2x4xf32>,
    return
  }
  func.func @transform_0(%arg0: i32) -> (i32, i32) {
    %c0_i32 = arith.constant 0 : i32
    %c0_i32_0 = arith.constant 0 : i32
    return %arg0, %c0_i32 : i32, i32
  }
  func.func @transform_1(%arg0: i32) -> (i32, i32) {
    %c0_i32 = arith.constant 0 : i32
    %c0_i32_0 = arith.constant 0 : i32
    return %arg0, %c0_i32 : i32, i32
  }
  func.func @transform_2(%arg0: i32) -> (i32, i32) {
    %c0_i32 = arith.constant 0 : i32
    %c0_i32_0 = arith.constant 0 : i32
    %c0_i32_1 = arith.constant 0 : i32
    return %c0_i32, %c0_i32_0 : i32, i32
  }
  func.func @transform_3(%arg0: i32) -> (i32, i32) {
    %c0_i32 = arith.constant 0 : i32
    %c0_i32_0 = arith.constant 0 : i32
    %c0_i32_1 = arith.constant 0 : i32
    return %c0_i32, %c0_i32_0 : i32, i32
  }
  func.func @transform_4(%arg0: i32) -> (i32, i32) {
    %c0_i32 = arith.constant 0 : i32
    %c0_i32_0 = arith.constant 0 : i32
    %c0_i32_1 = arith.constant 0 : i32
    return %c0_i32, %c0_i32_0 : i32, i32
  }
  func.func @transform_5(%arg0: i32) -> (i32, i32) {
    %c0_i32 = arith.constant 0 : i32
    %c0_i32_0 = arith.constant 0 : i32
    %c0_i32_1 = arith.constant 0 : i32
    return %c0_i32, %c0_i32_0 : i32, i32
  }
  func.func @transform_6(%arg0: i32) -> (i32, i32) {
    %c0_i32 = arith.constant 0 : i32
    %c0_i32_0 = arith.constant 0 : i32
    %c0_i32_1 = arith.constant 0 : i32
    return %c0_i32, %c0_i32_0 : i32, i32
  }
  func.func @transform_7(%arg0: i32) -> (i32, i32) {
    %c0_i32 = arith.constant 0 : i32
    %c0_i32_0 = arith.constant 0 : i32
    %c0_i32_1 = arith.constant 0 : i32
    return %c0_i32, %c0_i32_0 : i32, i32
  }
  func.func @transform_8(%arg0: i32) -> (i32, i32) {
    %c0_i32 = arith.constant 0 : i32
    %c0_i32_0 = arith.constant 0 : i32
    %c0_i32_1 = arith.constant 0 : i32
    return %c0_i32, %c0_i32_0 : i32, i32
  }
  func.func @transform_9(%arg0: i32) -> (i32, i32) {
    %c0_i32 = arith.constant 0 : i32
    %c0_i32_0 = arith.constant 0 : i32
    %c0_i32_1 = arith.constant 0 : i32
    return %c0_i32, %c0_i32_0 : i32, i32
  }
  func.func @transform_10(%arg0: i32) -> (i32, i32) {
    %c0_i32 = arith.constant 0 : i32
    %c0_i32_0 = arith.constant 0 : i32
    %c0_i32_1 = arith.constant 0 : i32
    return %c0_i32, %c0_i32_0 : i32, i32
  }
  func.func @transform_11(%arg0: i32) -> (i32, i32) {
    %c0_i32 = arith.constant 0 : i32
    %c0_i32_0 = arith.constant 0 : i32
    return %arg0, %c0_i32 : i32, i32
  }
}

</mosaic_0001>

<bundles_post_ra>
// kernel: inverse_model_forward.1
= control target key start
LH: loop header
LB: loop body
LE: loop exit
PB: predicated region body
PF: predicated region fallthrough
CT: control target
= control target key end

     0   :  { %vm50_vm0 = vcmask 1043456   ;;  %v506_v2 = vmov 0.0   ;;  %vm46_vm1 = vcmask 64512   ;;  %vm507_vm2 = vmmov 0   ;;  %s639_s0 = inlined_call_operand.vmem [shape: f32[2,8], index: 0, kind: input, shape index: {}]   ;;  %s640_s1 = inlined_call_operand.vmem [shape: f32[2,8], index: 1, kind: input, shape index: {}]   ;;  %s641_s2 = inlined_call_operand.vmem [shape: bf16[8,64], index: 2, kind: input, shape index: {}]   ;;  %s642_s3 = inlined_call_operand.vmem [shape: bf16[8,64], index: 3, kind: input, shape index: {}]   ;;  %s643_s4 = inlined_call_operand.vmem [shape: f32[1,64], index: 4, kind: input, shape index: {}]   ;;  %s644_s5 = inlined_call_operand.vmem [shape: bf16[64,64], index: 5, kind: input, shape index: {}]   ;;  %s645_s6 = inlined_call_operand.vmem [shape: f32[1,64], index: 6, kind: input, shape index: {}]   ;;  %s646_s7 = inlined_call_operand.vmem [shape: bf16[64,16], index: 7, kind: input, shape index: {}]   ;;  %s647_s8 = inlined_call_operand.vmem [shape: f32[1,16], index: 8, kind: input, shape index: {}]   ;;  %s648_s9 = inlined_call_operand.vmem [shape: bf16[16,4], index: 9, kind: input, shape index: {}]   ;;  %s649_s10 = inlined_call_operand.vmem [shape: f32[1,4], index: 10, kind: input, shape index: {}]   ;;  %s650_s11 = inlined_call_operand.hbm [shape: f32[2,4], index: 11, kind: output, shape index: {}]  }
   0x1   :  { %v45_v0 = vld [vmem:[%s642_s3] sm:$0xf]  ;;  %428 = vmatprep.subr.bf16.mxu0 %v506_v2  ;;  %434 = vmatprep.subr.bf16.mxu1 %v506_v2  ;;  %v474_v10 = vld [vmem:[%s644_s5 + $0x8] sm:$0xff]  }
   0x2   :  { %v44_v1 = vld [vmem:[%s641_s2] sm:$0xf]  ;;  %v52_v3 = vsel %vm50_vm0, %v45_v0, 0  ;;  %430 = vmatprep.mubr.msk.bf16.mxu0 %vm507_vm2, %v506_v2  ;;  %436 = vmatprep.mubr.msk.bf16.mxu1 %vm507_vm2, %v506_v2 }
   0x3   :  { %v98_v4 = vsel %vm50_vm0, %v44_v1, 0  ;;  %v42_v5 = vld [vmem:[%s640_s1] sm:$0x3]  ;;  %429 = vmatpush3.bf16.msra.mxu0 %v52_v3 }
   0x4   :  { %435 = vmatpush3.bf16.msra.mxu1 %v98_v4  ;;  %v43_v6 = vpack.c.bf16 %v42_v5, %v42_v5  ;;  %v40_v7 = vld [vmem:[%s639_s0] sm:$0x3]  ;;  %440 = vmatprep.subr.bf16.mxu0 %v506_v2 }
   0x5   :  { %v41_v8 = vpack.c.bf16 %v40_v7, %v40_v7  ;;  %v473_v9 = vld [vmem:[%s644_s5] sm:$0xff]   ;;  %452 = vmatprep.subr.bf16.mxu1 %v506_v2 }
   0x6   :  { %431 = vmatmul.mubr.msk.bf16.vlgmr.msra.gmra.mrb[0].mxu0 %vm46_vm1, %v43_v6 }
   0x7   :  { %437 = vmatmul.mubr.msk.bf16.vlgmr.msra.gmra.mrb[0].mxu1 %vm46_vm1, %v41_v8  ;;  %441 = vmatpush3.bf16.msra.mxu0 %v473_v9 }
   0x8   :  { %448 = vmatprep.mubr.msk.bf16.mxu0 %vm507_vm2, %v506_v2  ;;  %442 = vmatprep.subr.bf16.mxu0 %v506_v2 }
   0x9   :  { %460 = vmatprep.mubr.msk.bf16.mxu1 %vm507_vm2, %v506_v2 }
   0xa   :  { %16 = vsyncpa [#allocation3], 0  ;;  %v475_v11 = vld [vmem:[%s644_s5 + $0x10] sm:$0xff]   ;;  %v476_v12 = vld [vmem:[%s644_s5 + $0x18] sm:$0xff]   ;;  %vm189_vm3 = vcmask 523264   ;;  %vm334_vm4 = vcmask 130048  }
   0xb   :  { %443 = vmatpush3.bf16.msra.mxu0 %v474_v10  ;;  %v477_v13 = vld [vmem:[%s646_s7] sm:$0xff]   ;;  %v478_v14 = vld [vmem:[%s646_s7 + $0x8] sm:$0xff]   ;;  %v479_v28 = vld [vmem:[%s646_s7 + $0x10] sm:$0xff]   ;;  %s508_s23 = smov [#allocation2]   ;;  %vm378_vm5 = vcmask 25600  }
   0xc   :  { %444 = vmatprep.subr.bf16.mxu0 %v506_v2  ;;  %453 = vmatpush3.bf16.msra.mxu1 %v477_v13  ;;  %v396_v17 = vld [vmem:[%s643_s4] ss:$0 sm:$0xff]  ;;  %v480_v29 = vld [vmem:[%s646_s7 + $0x18] sm:$0xff]   ;;  %s386_s3 = sshll.u32 %s508_s23, 4  ;;  %s387_s3 = int_to_ptr.vmem [resolvable:$true] %s386_s3 }
   0xd   :  { %454 = vmatprep.subr.bf16.mxu1 %v506_v2  ;;  %v481_v30 = vld [vmem:[%s648_s9] sm:$0xff]   ;;  %p487_p1 = scmp.lt.s32.totalorder %s387_s3, %s387_s3 }
   0xe   :  { %v397_v31 = vld [vmem:[%s645_s6] ss:$0 sm:$0xff] }
   0xf   :  { %445 = vmatpush3.bf16.msra.mxu0 %v475_v11  ;;  %v403_v39 = vld [vmem:[%s647_s8] ss:$0 sm:$0xff]  ;;  %s482_s8 = scalar_lea.vmem %s387_s3, 32 }
  0x10   :  { %446 = vmatprep.subr.bf16.mxu0 %v506_v2  ;;  %455 = vmatpush3.bf16.msra.mxu1 %v478_v14  ;;  %v409_v47 = vld [vmem:[%s649_s10] ss:$0 sm:$0xff]  ;;  %p483_p0 = scmp.ne.s32.totalorder %s387_s3, %s482_s8  ;;  %p488_p2 = scmp.lt.s32.totalorder %s482_s8, %s482_s8 }
  0x11   :  { %456 = vmatprep.subr.bf16.mxu1 %v506_v2 }
  0x12   :  { %p489_p3 = por %p488_p2, %p487_p1 }
  0x13   :  { %447 = vmatpush3.bf16.msra.mxu0 %v476_v12 }
  0x14   :  { %464 = vmatprep.subr.bf16.mxu0 %v506_v2  ;;  %457 = vmatpush3.bf16.msra.mxu1 %v479_v28  ;;  %p490_p4 = pnand %p489_p3, %p483_p0 }
  0x15   :  { %458 = vmatprep.subr.bf16.mxu1 %v506_v2 }
  0x18   :  { %459 = vmatpush3.bf16.msra.mxu1 %v480_v29 }
  0xd9   :  { %v88_v15 = vpop.f32.mrb[0].mxu0 }
  0xda   :  { %v134_v16 = vpop.f32.mrb[0].mxu1  ;;  %v432_v19 = vpop.f32.mrb[1].mxu0 }
  0xdb   :  { %v135_v18 = vadd.f32 %v134_v16, %v88_v15  ;;  %v438_v20 = vpop.f32.mrb[1].mxu1  ;;  %v91_v21 = vpop.f32.mrb[2].mxu0 }
  0xdc   :  { %v137_v22 = vpop.f32.mrb[2].mxu1  ;;  %v433_v24 = vpop.f32.mrb[3].mxu0 }
  0xdd   :  { %v147_v23 = vadd.f32 %v396_v17, %v135_v18  ;;  %v439_v25 = vpop.f32.mrb[3].mxu1 }
  0xdf   :  { %v148_v26 = vmax.f32 %v147_v23, 0.0 }
  0xe1   :  { %v149_v27 = vpack.c.bf16 %v148_v26, %v148_v26 }
  0xe3   :  { %449 = vmatmul.mubr.msk.bf16.vlgmr.msra.gmra.mrb[4].mxu0 %vm189_vm3, %v149_v27 }
  0xe4   :  { %466 = vmatprep.mubr.msk.bf16.mxu0 %vm507_vm2, %v506_v2  ;;  %465 = vmatpush3.bf16.msra.mxu0 %v481_v30 }
 0x1b6   :  { %v227_v32 = vpop.f32.mrb[4].mxu0 }
 0x1b7   :  { %v228_v33 = vadd.f32 %v397_v31, %v227_v32  ;;  %v450_v34 = vpop.f32.mrb[5].mxu0 }
 0x1b8   :  { %v230_v35 = vpop.f32.mrb[6].mxu0 }
 0x1b9   :  { %v233_v36 = vmax.f32 %v228_v33, 0.0  ;;  %v451_v37 = vpop.f32.mrb[7].mxu0 }
 0x1bb   :  { %v234_v38 = vpack.c.bf16 %v233_v36, %v233_v36 }
 0x1bd   :  { %461 = vmatmul.mubr.msk.bf16.vlgmr.msra.gmra.mrb[4].mxu1 %vm189_vm3, %v234_v38 }
 0x290   :  { %v311_v40 = vpop.f32.mrb[4].mxu1 }
 0x291   :  { %v312_v41 = vadd.f32 %v403_v39, %v311_v40  ;;  %v462_v42 = vpop.f32.mrb[5].mxu1 }
 0x292   :  { %v314_v43 = vpop.f32.mrb[6].mxu1 }
 0x293   :  { %v317_v44 = vmax.f32 %v312_v41, 0.0  ;;  %v463_v45 = vpop.f32.mrb[7].mxu1 }
 0x295   :  { %v318_v46 = vpack.c.bf16 %v317_v44, %v317_v44 }
 0x297   :  { %467 = vmatmul.mubr.msk.bf16.vlgmr.msra.gmra.mrb[8].mxu0 %vm334_vm4, %v318_v46 }
 0x36a   :  { %v372_v48 = vpop.f32.mrb[8].mxu0 }
 0x36b   :  { %v373_v49 = vadd.f32 %v409_v47, %v372_v48  ;;  %v468_v50 = vpop.f32.mrb[9].mxu0 }
 0x36c   :  { %v375_v51 = vpop.f32.mrb[10].mxu0 }
 0x36d   :  { %v469_v52 = vpop.f32.mrb[11].mxu0  ;;  %379 = vst.msk [vmem:[#allocation2] sm:$0x3] %vm378_vm5, %v373_v49 }
 0x36e   :  { %493 = shalt.err (!%p490_p4)
}
 0x36f   :  { %s494_s10 = scalar_lea.hbm %s650_s11, 32 }
 0x370   :  { %p495_p5 = scmp.ne.s32.totalorder %s650_s11, %s494_s10  ;;  %p498_p6 = scmp.lt.u32.totalorder %s494_s10, %s650_s11 }
 0x372   :  { %p500_p7 = pnand %p498_p6, %p495_p5 }
 0x374   :  { %503 = shalt.err (!%p500_p7)
}
 0x375   :  { %389 = dma.vmem_to_hbm [thread:$0]  %s387_s3, 32, %s650_s11, [#allocation3]  }
 0x376   :  { %504 = dma.done.wait [#allocation3], 32  }
 0x377   :  { %505 = vsyncadd [#allocation3], 4294967264 }
 0x378   :  { %393 = vsyncpa [#allocation3], 1 }

</bundles_post_ra>
